<compile_context>
chip_gen: v6e
topology: v6e:2x2x1
jax: 0.10.0
libtpu: 0.0.40
codegen_flags: <defaults>
</compile_context>

<pallas_src>
import jax
import jax.numpy as jnp
from jax.experimental import pallas as pl
from jax.experimental.pallas import tpu as pltpu

IN_FEATURES = 10
OUT_FEATURES = 5

# Batch tile for the tiled (large-batch) path. Multiple of 8 (f32 sublane).
_BATCH_TILE = 256


def linear_kernel(x_ref, w_ref, b_ref, o_ref):
    # x_ref: (TB, IN), w_ref: (IN, OUT), b_ref: (1, OUT), o_ref: (TB, OUT)
    acc = jnp.dot(x_ref[...], w_ref[...], preferred_element_type=jnp.float32)
    o_ref[...] = (acc + b_ref[...]).astype(o_ref.dtype)


def _forward_no_grid(x, w_t, b2):
    """Small-batch path: whole problem as single VMEM blocks, no grid/pipeline."""
    B = x.shape[0]
    return pl.pallas_call(
        linear_kernel,
        out_shape=jax.ShapeDtypeStruct((B, OUT_FEATURES), x.dtype),
        in_specs=[
            pl.BlockSpec(memory_space=pltpu.MemorySpace.VMEM),
            pl.BlockSpec(memory_space=pltpu.MemorySpace.VMEM),
            pl.BlockSpec(memory_space=pltpu.MemorySpace.VMEM),
        ],
        out_specs=pl.BlockSpec(memory_space=pltpu.MemorySpace.VMEM),
    )(x, w_t, b2)


def _forward_batched(x, w_t, b2, tb):
    """Large-batch path: tile the batch axis; W and bias stay resident."""
    B = x.shape[0]
    return pl.pallas_call(
        linear_kernel,
        out_shape=jax.ShapeDtypeStruct((B, OUT_FEATURES), x.dtype),
        grid_spec=pltpu.PrefetchScalarGridSpec(
            num_scalar_prefetch=0,
            grid=(B // tb,),
            in_specs=[
                pl.BlockSpec((tb, IN_FEATURES), lambda i: (i, 0)),
                pl.BlockSpec((IN_FEATURES, OUT_FEATURES), lambda i: (0, 0)),
                pl.BlockSpec((1, OUT_FEATURES), lambda i: (0, 0)),
            ],
            out_specs=pl.BlockSpec((tb, OUT_FEATURES), lambda i: (i, 0)),
        ),
        compiler_params=pltpu.CompilerParams(
            dimension_semantics=("parallel",),  # v7x: both TCs take half the batch
        ),
    )(x, w_t, b2)


def simple_model_forward(x, w_t, b):
    """x: (B, IN) f32, w_t: (IN, OUT) f32 (pre-transposed weight), b: (OUT,) f32."""
    B = x.shape[0]
    b2 = b.reshape(1, OUT_FEATURES)  # reshaped once, outside any grid loop

    if B < _BATCH_TILE:
        return _forward_no_grid(x, w_t, b2)

    # Pad batch to a tile multiple (plain-JAX glue), run tiled, slice back.
    pad = (-B) % _BATCH_TILE
    x_p = jnp.pad(x, ((0, pad), (0, 0))) if pad else x
    out = _forward_batched(x_p, w_t, b2, _BATCH_TILE)
    return out[:B] if pad else out


if __name__ == "__main__":
    key = jax.random.PRNGKey(0)
    kx, kw, kb, kx2 = jax.random.split(key, 4)

    # Deterministic parameter init (PyTorch nn.Linear shapes: weight (5,10), bias (5,)).
    bound = 1.0 / jnp.sqrt(jnp.float32(IN_FEATURES))
    weight = jax.random.uniform(
        kw, (OUT_FEATURES, IN_FEATURES), dtype=jnp.float32, minval=-bound, maxval=bound
    )
    bias = jax.random.uniform(
        kb, (OUT_FEATURES,), dtype=jnp.float32, minval=-bound, maxval=bound
    )
    w_t = weight.T  # (IN, OUT), pre-transposed glue in plain JAX

    # --- Small batch: no-grid path (matches the PyTorch module's typical use). ---
    batch = 8
    x = jax.random.normal(kx, (batch, IN_FEATURES), dtype=jnp.float32)
    out = simple_model_forward(x, w_t, bias)
    jax.block_until_ready(out)
    ref = x @ w_t + bias[None, :]
    assert out.shape == (batch, OUT_FEATURES)
    assert jnp.allclose(out, ref, atol=1e-5, rtol=1e-5)

    # --- Larger batch: exercises the tiled, batch-parallel path. ---
    big_batch = 1024
    x_big = jax.random.normal(kx2, (big_batch, IN_FEATURES), dtype=jnp.float32)
    out_big = simple_model_forward(x_big, w_t, bias)
    jax.block_until_ready(out_big)
    ref_big = x_big @ w_t + bias[None, :]
    assert out_big.shape == (big_batch, OUT_FEATURES)
    assert jnp.allclose(out_big, ref_big, atol=1e-5, rtol=1e-5)

    print("KERNEL_OK")
</pallas_src>

<mosaic_0001>
module attributes {stable_mosaic.version = 11 : i64} {
  func.func @linear_kernel(%arg0: memref<8x10xf32, #tpu.memory_space<vmem>>, %arg1: memref<10x5xf32, #tpu.memory_space<vmem>>, %arg2: memref<1x5xf32, #tpu.memory_space<vmem>>, %arg3: memref<8x5xf32, #tpu.memory_space<vmem>>) attributes {dimension_semantics = [], scalar_prefetch = 0 : i64, scratch_operands = 0 : i64, tpu.core_type = #tpu.core_type<tc>} {
    %c0 = arith.constant 0 : index
    %c0_0 = arith.constant 0 : index
    %0 = vector.load %arg0[%c0, %c0_0] : memref<8x10xf32, #tpu.memory_space<vmem>>, vector<8x10xf32>
    %c0_1 = arith.constant 0 : index
    %c0_2 = arith.constant 0 : index
    %1 = vector.load %arg1[%c0_1, %c0_2] : memref<10x5xf32, #tpu.memory_space<vmem>>, vector<10x5xf32>
    %cst = arith.constant dense<0.000000e+00> : vector<8x5xf32>
    %2 = tpu.matmul %0, %1, %cst {dimension_numbers = #tpu.dot_dimension_numbers<[1], [0], [0], [1], [0, 0, 1, 1], [], []>} : vector<8x10xf32>, vector<10x5xf32>, vector<8x5xf32> -> vector<8x5xf32>
    %c0_3 = arith.constant 0 : index
    %c0_4 = arith.constant 0 : index
    %3 = vector.load %arg2[%c0_3, %c0_4] : memref<1x5xf32, #tpu.memory_space<vmem>>, vector<1x5xf32>
    %4 = vector.broadcast %3 : vector<1x5xf32> to vector<8x5xf32>
    %5 = arith.addf %2, %4 : vector<8x5xf32>
    %c0_5 = arith.constant 0 : index
    %c0_6 = arith.constant 0 : index
    %6 = vector.load %arg3[%c0_5, %c0_6] : memref<8x5xf32, #tpu.memory_space<vmem>>, vector<8x5xf32>
    tpu.vector_store %arg3[%c0_5, %c0_6], %5 {strides = array<i32>} : memref<8x5xf32, #tpu.memory_space<vmem>>, vector<8x5xf32>,
    return
  }
}

</mosaic_0001>

<bundles_post_ra>
// kernel: tpu_custom_call.1
= control target key start
LH: loop header
LB: loop body
LE: loop exit
PB: predicated region body
PF: predicated region fallthrough
CT: control target
= control target key end

     0   :  { %vm29_vm0 = vcmask 1041408   ;;  %v157_v1 = vmov 0.0   ;;  %vm158_vm1 = vmmov 0   ;;  %s195_s0 = inlined_call_operand.vmem [shape: f32[8,10], index: 0, kind: input, shape index: {}]   ;;  %s196_s1 = inlined_call_operand.vmem [shape: f32[10,5], index: 1, kind: input, shape index: {}]   ;;  %s197_s2 = inlined_call_operand.vmem [shape: f32[1,5], index: 2, kind: input, shape index: {}]   ;;  %s198_s3 = inlined_call_operand.hbm [shape: f32[8,5], index: 3, kind: output, shape index: {}]  }
   0x1   :  { %v17_v0 = vld [vmem:[%s196_s1 + $0x8] sm:$0x3]  ;;  %125 = vmatprep.subr.mxu0 %v157_v1  ;;  %v16_v2 = vld [vmem:[%s196_s1] sm:$0xff]  ;;  %129 = vmatprep.mubr.msk.f32.mxu0 %vm158_vm1, %v157_v1 }
   0x2   :  { %8 = vsyncpa [#allocation3], 0  ;;  %126 = vmatpush3.msk.msra.mxu0 %vm29_vm0, %v17_v0  ;;  %v15_v3 = vld [vmem:[%s195_s0] sm:$0xff]  ;;  %vm25_vm2 = vcmask 80896   ;;  %s159_s20 = smov [#allocation2]   ;;  %vm103_vm3 = vcmask 39936  }
   0x3   :  { %127 = vmatprep.subr.mxu0 %v157_v1  ;;  %v119_v4 = vld [vmem:[%s197_s2] ss:$0 sm:$0xff]  ;;  %s111_s21 = sshll.u32 %s159_s20, 4  ;;  %s112_s21 = int_to_ptr.vmem [resolvable:$true] %s111_s21 }
   0x4   :  { %128 = vmatpush3.msra.mxu0 %v16_v2  ;;  %s135_s1 = scalar_lea.vmem %s112_s21, 128  ;;  %p140_p1 = scmp.lt.s32.totalorder %s112_s21, %s112_s21 }
   0x5   :  { %130 = vmatmul.mubr.msk.f32.vlgmr.msra.gmra.mxu0 %vm25_vm2, %v15_v3  ;;  %p136_p0 = scmp.ne.s32.totalorder %s112_s21, %s135_s1  ;;  %p141_p2 = scmp.lt.s32.totalorder %s135_s1, %s135_s1 }
   0x7   :  { %p142_p3 = por %p141_p2, %p140_p1 }
   0x9   :  { %p143_p4 = pnand %p142_p3, %p136_p0 }
  0xc5   :  { %v99_v5 = vpop.f32.mrf.mxu0 }
  0xc6   :  { %v100_v6 = vadd.f32 %v119_v4, %v99_v5 }
  0xc7   :  { %v131_v7 = vpop.f32.mrf.mxu0 }
  0xc8   :  { %104 = vst.msk [vmem:[#allocation2] sm:$0xff] %vm103_vm3, %v100_v6 }
  0xc9   :  { %146 = shalt.err (!%p143_p4)
}
  0xca   :  { %114 = dma.vmem_to_hbm [thread:$0]  %s112_s21, 128, %s198_s3, [#allocation3]  }
  0xcb   :  { %155 = dma.done.wait [#allocation3], 128  }
  0xcc   :  { %156 = vsyncadd [#allocation3], 4294967168 }
  0xcd   :  { %118 = vsyncpa [#allocation3], 1 }

</bundles_post_ra>
